<compile_context>
chip_gen: v5e
topology: v5e:2x2
jax: 0.10.0
libtpu: 0.0.40
codegen_flags: <defaults>
</compile_context>

<pallas_src>
import functools

import jax
import jax.numpy as jnp
from jax import lax
from jax.experimental import pallas as pl
from jax.experimental.pallas import tpu as pltpu


def _round_up(x, m):
    return (x + m - 1) // m * m


def _const_block_spec(shape):
    """BlockSpec for a grid-constant operand (index map always (0,0)).

    Single-buffer it when this JAX exposes pipeline_mode; otherwise fall back to
    the default (double-buffered) spec so the kernel always compiles.
    """
    idx = lambda b, k: (0, 0)
    if hasattr(pl, "Buffered"):
        try:
            return pl.BlockSpec(shape, idx, pipeline_mode=pl.Buffered(1))
        except TypeError:
            pass
    return pl.BlockSpec(shape, idx)


# ----------------------------------------------------------------------------
# Kernel A: encoder -> packed [theta | KLD] lane-dense slab
# ----------------------------------------------------------------------------
def _encoder_kernel(x_ref, w1_ref, b1_ref, w2_ref, b2_ref, wm_ref, bm_ref,
                    wlv_ref, blv_ref, wd_ref, bd_ref, out_ref, acc_ref,
                    *, num_topic):
    k = pl.program_id(1)

    @pl.when(k == 0)
    def _():
        acc_ref[...] = jnp.zeros_like(acc_ref)

    # Vocab-reduction matmul: bf16 operands (x pre-cast in the wrapper), f32 acc.
    acc_ref[...] += jnp.dot(x_ref[...], w1_ref[...],
                            preferred_element_type=jnp.float32)

    @pl.when(k == pl.num_programs(1) - 1)
    def _():
        enc1 = jnp.tanh(acc_ref[...] + b1_ref[...])
        enc2 = jnp.tanh(
            jnp.dot(enc1, w2_ref[...], preferred_element_type=jnp.float32) + b2_ref[...])
        mean = jnp.dot(enc2, wm_ref[...], preferred_element_type=jnp.float32) + bm_ref[...]
        logvar = jnp.dot(enc2, wlv_ref[...], preferred_element_type=jnp.float32) + blv_ref[...]
        z = mean                                    # eval mode: z = posterior mean
        logits = jnp.dot(z, wd_ref[...], preferred_element_type=jnp.float32) + bd_ref[...]
        # softmax over the (padded) topic axis; padded logits carry -1e30 bias -> 0 prob
        m = jnp.max(logits, axis=-1, keepdims=True)
        e = jnp.exp(logits - m)
        theta = e * pl.reciprocal(jnp.sum(e, axis=-1, keepdims=True), approx=True)
        # Padded topic columns have mean=0, logvar=0 -> contribute 0 to KLD.
        kld = -0.5 * jnp.sum(1.0 - mean * mean + logvar - jnp.exp(logvar),
                             axis=1, keepdims=True)
        # Lane-dense packed output: cols [0,T) theta, col T KLD, rest zeros.
        col = lax.broadcasted_iota(jnp.int32, theta.shape, 1)
        out_ref[...] = jnp.where(
            col < num_topic, theta,
            jnp.where(col == num_topic, jnp.broadcast_to(kld, theta.shape), 0.0))


# ----------------------------------------------------------------------------
# Kernel B: recon / NL over (larger) vocab tiles, lane-dense accumulator
# ----------------------------------------------------------------------------
def _recon_kernel(theta_ref, beta_ref, x_ref, nl_ref, acc_ref):
    k = pl.program_id(1)

    @pl.when(k == 0)
    def _():
        acc_ref[...] = jnp.zeros_like(acc_ref)

    # theta slab's extra KLD column multiplies an all-zero beta row -> no effect.
    recon = jnp.dot(theta_ref[...].astype(jnp.bfloat16), beta_ref[...],
                    preferred_element_type=jnp.float32)              # [Bt, Vk]
    prod = x_ref[...].astype(jnp.float32) * jnp.log(recon + 1e-10)   # [Bt, Vk] f32

    # Lane-dense accumulation: fold the Vk lanes into 128 with plain VPU adds
    # (static, lane-tile-aligned slices are free vreg selections). The single
    # cross-lane reduce happens only in the finalize branch.
    nchunks = prod.shape[1] // 128
    part = prod[:, 0:128]
    for c in range(1, nchunks):
        part = part + prod[:, c * 128:(c + 1) * 128]
    acc_ref[...] += part

    @pl.when(k == pl.num_programs(1) - 1)
    def _():
        total = jnp.sum(acc_ref[...], axis=1, keepdims=True)          # [Bt, 1]
        nl_ref[...] = jnp.broadcast_to(-total, nl_ref.shape)          # lane-dense store


# ----------------------------------------------------------------------------
# Wrapper
# ----------------------------------------------------------------------------
@functools.partial(jax.jit, static_argnames=("block_b", "block_v", "block_v_b"))
def gsm_forward(x, params, block_b=None, block_v=None, block_v_b=None):
    """GSM eval forward. x: [B, vocab] f32. Returns (outputs, theta, topic_loss)."""
    B, V = x.shape
    T = params["dec_w"].shape[0]
    H2 = params["w1"].shape[1]
    H = params["w2"].shape[1]
    f32 = jnp.float32
    bf16 = jnp.bfloat16

    # ----- batch tiling -----
    Bp8 = _round_up(B, 8)
    if block_b is not None:
        Bt = block_b
    elif Bp8 >= 512:
        Bt = 256                      # fills v6e/v7x MXU M; halves w1/beta re-streaming
    elif Bp8 >= 16:
        Bt = _round_up(Bp8 // 2, 8)   # keep >= 2 batch blocks so both v7x cores get work
    else:
        Bt = Bp8
    assert Bt % 8 == 0
    Bp = _round_up(B, Bt)

    # ----- vocab tiling (kernel A) -----
    Vk = block_v if block_v is not None else min(2048, _round_up(V, 128))
    assert Vk % 128 == 0
    Vp = _round_up(V, Vk)
    nV = Vp // Vk

    # ----- vocab tiling (kernel B): larger tile, must divide Vp -----
    if block_v_b is not None:
        Vkb = block_v_b
        assert Vkb % 128 == 0 and Vp % Vkb == 0
    else:
        mb = 1
        for m in range(1, nV + 1):
            if nV % m == 0 and m * Vk <= 8192:
                mb = m
        Vkb = mb * Vk
    nVb = Vp // Vkb

    Tp = _round_up(T + 1, 128)        # lane-dense topic axis; +1 col carries KLD

    # ----- pad / pre-transform operands -----
    # x: cast to bf16 FIRST (pad pass then writes half the bytes), skip pad if aligned.
    x_p = x.astype(bf16)
    if (Bp, Vp) != (B, V):
        x_p = jnp.pad(x_p, ((0, Bp - B), (0, Vp - V)))
    w1_p = jnp.pad(params["w1"].astype(bf16), ((0, Vp - V), (0, 0)))
    wm_p = jnp.pad(params["wm"], ((0, 0), (0, Tp - T)))
    bm_p = jnp.pad(params["bm"], ((0, 0), (0, Tp - T)))
    wlv_p = jnp.pad(params["wlv"], ((0, 0), (0, Tp - T)))
    blv_p = jnp.pad(params["blv"], ((0, 0), (0, Tp - T)))
    wd_p = jnp.pad(params["dec_w"], ((0, Tp - T), (0, Tp - T)))
    bd_p = jnp.concatenate([params["dec_b"],
                            jnp.full((1, Tp - T), -1e30, f32)], axis=1)

    # beta = softmax(topic_vec @ word_vec^T): x-independent, hoisted out of the
    # gridded kernels, bf16-cast before padding.
    beta = jax.nn.softmax(
        jnp.dot(params["topic_vec"], params["word_vec"].T,
                preferred_element_type=f32), axis=-1)
    beta_p = jnp.pad(beta.astype(bf16), ((0, Tp - T), (0, Vp - V)))

    nB = Bp // Bt

    # ----- VMEM budget: size to actual usage, never the full 64 MiB of a v7x TC -----
    small_w_bytes = (H2 + H2 * H + H + 2 * H * Tp + 2 * Tp + Tp * Tp + Tp) * 4
    vmem_a = (2 * Bt * Vk * 2          # x bf16, double-buffered
              + 2 * Vk * H2 * 2        # w1 bf16, double-buffered
              + 2 * small_w_bytes      # conservative (double-buffer) bound
              + 2 * Bt * Tp * 4        # packed output
              + Bt * H2 * 4)           # f32 accumulator scratch
    vmem_b = (2 * Bt * Tp * 4 + 2 * Tp * Vkb * 2 + 2 * Bt * Vkb * 2
              + 2 * Bt * 128 * 4 + Bt * 128 * 4)
    vmem_limit = min(48 * 1024 * 1024,
                     max(32 * 1024 * 1024, int(1.25 * max(vmem_a, vmem_b)) + (2 << 20)))

    cparams = pltpu.CompilerParams(
        dimension_semantics=("parallel", "arbitrary"),
        vmem_limit_bytes=vmem_limit)

    # ---------------- kernel A ----------------
    cost_a = pl.CostEstimate(
        flops=2 * Bp * Vp * H2 + 2 * Bp * H2 * H + 4 * Bp * H * Tp + 2 * Bp * Tp * Tp,
        transcendentals=Bp * (H2 + H + 2 * Tp),
        bytes_accessed=2 * Bp * Vp + 2 * Vp * H2 * nB + 4 * Bp * Tp,
    )
    packed = pl.pallas_call(
        functools.partial(_encoder_kernel, num_topic=T),
        out_shape=jax.ShapeDtypeStruct((Bp, Tp), f32),
        grid_spec=pltpu.PrefetchScalarGridSpec(
            num_scalar_prefetch=0,
            grid=(nB, nV),
            in_specs=[
                pl.BlockSpec((Bt, Vk), lambda b, k: (b, k)),   # x (bf16)
                pl.BlockSpec((Vk, H2), lambda b, k: (k, 0)),   # w1 (bf16)
                _const_block_spec((1, H2)),                    # b1
                _const_block_spec((H2, H)),                    # w2
                _const_block_spec((1, H)),                     # b2
                _const_block_spec((H, Tp)),                    # wm
                _const_block_spec((1, Tp)),                    # bm
                _const_block_spec((H, Tp)),                    # wlv
                _const_block_spec((1, Tp)),                    # blv
                _const_block_spec((Tp, Tp)),                   # dec_w
                _const_block_spec((1, Tp)),                    # dec_b
            ],
            out_specs=pl.BlockSpec((Bt, Tp), lambda b, k: (b, 0)),
            scratch_shapes=[pltpu.VMEM((Bt, H2), f32)],
        ),
        compiler_params=cparams,
        cost_estimate=cost_a,
    )(x_p, w1_p, params["b1"], params["w2"], params["b2"],
      wm_p, bm_p, wlv_p, blv_p, wd_p, bd_p)

    # ---------------- kernel B ----------------
    cost_b = pl.CostEstimate(
        flops=2 * Bp * Tp * Vp + 3 * Bp * Vp,
        transcendentals=Bp * Vp,
        bytes_accessed=2 * Bp * Vp + 2 * Tp * Vp * nB + 4 * Bp * Tp + 4 * Bp * 128,
    )
    nl_slab = pl.pallas_call(
        _recon_kernel,
        out_shape=jax.ShapeDtypeStruct((Bp, 128), f32),
        grid_spec=pltpu.PrefetchScalarGridSpec(
            num_scalar_prefetch=0,
            grid=(nB, nVb),
            in_specs=[
                pl.BlockSpec((Bt, Tp), lambda b, k: (b, 0)),    # packed theta slab
                pl.BlockSpec((Tp, Vkb), lambda b, k: (0, k)),   # beta (bf16)
                pl.BlockSpec((Bt, Vkb), lambda b, k: (b, k)),   # x (bf16)
            ],
            out_specs=pl.BlockSpec((Bt, 128), lambda b, k: (b, 0)),
            scratch_shapes=[pltpu.VMEM((Bt, 128), f32)],
        ),
        compiler_params=cparams,
        cost_estimate=cost_b,
    )(packed, beta_p, x_p)

    theta = packed[:B, :T]
    kld = packed[:B, T]
    nl = nl_slab[:B, 0]
    topic_loss = jnp.mean(nl + kld)
    outputs = {"loss": topic_loss, "recon_word": jnp.mean(nl), "KL": jnp.mean(kld)}
    return outputs, theta, topic_loss


# ----------------------------------------------------------------------------
# Deterministic synthetic parameters mirroring GSM.__init__ / reset_parameters.
# Linear weights stored as [in_features, out_features] (transposed vs torch).
# ----------------------------------------------------------------------------
def init_params(key, vocab_size, enc_nh, num_topic, ni, init_mult=1.0):
    ks = jax.random.split(key, 8)

    def lin(k, fan_in, fan_out):
        bound = 1.0 / jnp.sqrt(fan_in)
        kw, kb = jax.random.split(k)
        w = jax.random.uniform(kw, (fan_in, fan_out), jnp.float32, -bound, bound)
        b = jax.random.uniform(kb, (1, fan_out), jnp.float32, -bound, bound)
        return w, b

    w1, b1 = lin(ks[0], vocab_size, 2 * enc_nh)
    w2, b2 = lin(ks[1], 2 * enc_nh, enc_nh)
    wm, bm = lin(ks[2], enc_nh, num_topic)
    wlv = jnp.zeros((enc_nh, num_topic), jnp.float32)     # logvar_fc zero-init
    blv = jnp.zeros((1, num_topic), jnp.float32)
    dec_w = jax.random.uniform(ks[3], (num_topic, num_topic), jnp.float32, 0.0, init_mult)
    dec_b = jax.random.uniform(ks[4], (1, num_topic), jnp.float32,
                               -1.0 / jnp.sqrt(num_topic), 1.0 / jnp.sqrt(num_topic))
    word_vec = 0.01 * jax.random.normal(ks[5], (vocab_size, ni), jnp.float32)
    topic_vec = jax.random.normal(ks[6], (num_topic, ni), jnp.float32)

    return {"w1": w1, "b1": b1, "w2": w2, "b2": b2, "wm": wm, "bm": bm,
            "wlv": wlv, "blv": blv, "dec_w": dec_w, "dec_b": dec_b,
            "word_vec": word_vec, "topic_vec": topic_vec}


def gsm_reference(x, params):
    """Pure-JAX f32 reference matching the torch eval-mode forward."""
    enc1 = jnp.tanh(x @ params["w1"] + params["b1"])
    enc2 = jnp.tanh(enc1 @ params["w2"] + params["b2"])
    mean = enc2 @ params["wm"] + params["bm"]
    logvar = enc2 @ params["wlv"] + params["blv"]
    theta = jax.nn.softmax(mean @ params["dec_w"] + params["dec_b"], axis=-1)
    beta = jax.nn.softmax(params["topic_vec"] @ params["word_vec"].T, axis=-1)
    recon = theta @ beta
    nl = -jnp.sum(x * jnp.log(recon + 1e-10), axis=1)
    kld = -0.5 * jnp.sum(1.0 - mean ** 2 + logvar - jnp.exp(logvar), axis=1)
    return theta, nl, kld


if __name__ == "__main__":
    # Small shapes consistent with the module: batch=16, vocab=512, enc_nh=64,
    # num_topic=16, ni=32.  Small blocks exercise kernel A grid (2, 4) and
    # kernel B grid (2, 2) with a larger, decoupled vocab tile.
    B, V, H, T, NI = 16, 512, 64, 16, 32

    key = jax.random.PRNGKey(0)
    k_x, k_p = jax.random.split(key)
    x = jnp.abs(jax.random.normal(k_x, (B, V), jnp.float32))   # bag-of-words-like
    params = init_params(k_p, V, H, T, NI)

    outputs, theta, topic_loss = gsm_forward(x, params, block_b=8, block_v=128,
                                             block_v_b=256)
    jax.block_until_ready((outputs, theta, topic_loss))

    assert theta.shape == (B, T)
    assert bool(jnp.isfinite(topic_loss))

    # Loose correctness check vs f32 reference (bf16 matmul/x operands + approx recip).
    theta_ref, nl_ref, kld_ref = gsm_reference(x, params)
    loss_ref = float(jnp.mean(nl_ref + kld_ref))
    assert bool(jnp.allclose(theta, theta_ref, rtol=0.1, atol=5e-3)), "theta mismatch"
    assert abs(float(topic_loss) - loss_ref) <= 0.02 * abs(loss_ref) + 1.0, "loss mismatch"

    # Default (auto) tiling path must also compile and agree.
    _, theta2, loss2 = gsm_forward(x, params)
    jax.block_until_ready(loss2)
    assert bool(jnp.isfinite(loss2))
    assert abs(float(loss2) - float(topic_loss)) <= 0.02 * abs(loss_ref) + 1.0, \
        "default-tiling loss mismatch"

    print("KERNEL_OK")
</pallas_src>

<mosaic_0001>
module attributes {stable_mosaic.version = 11 : i64} {
  func.func @_encoder_kernel(%arg0: i32, %arg1: i32, %arg2: memref<8x128xbf16, #tpu.memory_space<vmem>>, %arg3: memref<128x128xbf16, #tpu.memory_space<vmem>>, %arg4: memref<1x128xf32, #tpu.memory_space<vmem>>, %arg5: memref<128x64xf32, #tpu.memory_space<vmem>>, %arg6: memref<1x64xf32, #tpu.memory_space<vmem>>, %arg7: memref<64x128xf32, #tpu.memory_space<vmem>>, %arg8: memref<1x128xf32, #tpu.memory_space<vmem>>, %arg9: memref<64x128xf32, #tpu.memory_space<vmem>>, %arg10: memref<1x128xf32, #tpu.memory_space<vmem>>, %arg11: memref<128x128xf32, #tpu.memory_space<vmem>>, %arg12: memref<1x128xf32, #tpu.memory_space<vmem>>, %arg13: memref<8x128xf32, #tpu.memory_space<vmem>>, %arg14: memref<8x128xf32, #tpu.memory_space<vmem>>) attributes {dimension_semantics = [#tpu.dimension_semantics<parallel>, #tpu.dimension_semantics<arbitrary>], iteration_bounds = array<i64: 2, 4>, scalar_prefetch = 0 : i64, scratch_operands = 1 : i64, tpu.core_type = #tpu.core_type<tc>, window_params = [{transform_indices = @transform_0, window_bounds = array<i64: 8, 128>}, {transform_indices = @transform_1, window_bounds = array<i64: 128, 128>}, {pipeline_mode = #tpu.pipeline_mode<synchronous>, transform_indices = @transform_2, window_bounds = array<i64: 1, 128>}, {pipeline_mode = #tpu.pipeline_mode<synchronous>, transform_indices = @transform_3, window_bounds = array<i64: 128, 64>}, {pipeline_mode = #tpu.pipeline_mode<synchronous>, transform_indices = @transform_4, window_bounds = array<i64: 1, 64>}, {pipeline_mode = #tpu.pipeline_mode<synchronous>, transform_indices = @transform_5, window_bounds = array<i64: 64, 128>}, {pipeline_mode = #tpu.pipeline_mode<synchronous>, transform_indices = @transform_6, window_bounds = array<i64: 1, 128>}, {pipeline_mode = #tpu.pipeline_mode<synchronous>, transform_indices = @transform_7, window_bounds = array<i64: 64, 128>}, {pipeline_mode = #tpu.pipeline_mode<synchronous>, transform_indices = @transform_8, window_bounds = array<i64: 1, 128>}, {pipeline_mode = #tpu.pipeline_mode<synchronous>, transform_indices = @transform_9, window_bounds = array<i64: 128, 128>}, {pipeline_mode = #tpu.pipeline_mode<synchronous>, transform_indices = @transform_10, window_bounds = array<i64: 1, 128>}, {transform_indices = @transform_11, window_bounds = array<i64: 8, 128>}]} {
    %c0_i32 = arith.constant 0 : i32
    %0 = arith.cmpi eq, %arg1, %c0_i32 : i32
    %1 = arith.extui %0 : i1 to i32
    %c0_i32_0 = arith.constant 0 : i32
    %2 = arith.cmpi ne, %1, %c0_i32_0 : i32
    scf.if %2 {
      %cst_9 = arith.constant 0.000000e+00 : f32
      %12 = vector.broadcast %cst_9 : f32 to vector<8x128xf32>
      %c0_10 = arith.constant 0 : index
      %c0_11 = arith.constant 0 : index
      %13 = vector.load %arg14[%c0_10, %c0_11] : memref<8x128xf32, #tpu.memory_space<vmem>>, vector<8x128xf32>
      tpu.vector_store %arg14[%c0_10, %c0_11], %12 {strides = array<i32>} : memref<8x128xf32, #tpu.memory_space<vmem>>, vector<8x128xf32>,
    } else {
    }
    %c0 = arith.constant 0 : index
    %c0_1 = arith.constant 0 : index
    %3 = vector.load %arg14[%c0, %c0_1] : memref<8x128xf32, #tpu.memory_space<vmem>>, vector<8x128xf32>
    %c0_2 = arith.constant 0 : index
    %c0_3 = arith.constant 0 : index
    %4 = vector.load %arg2[%c0_2, %c0_3] : memref<8x128xbf16, #tpu.memory_space<vmem>>, vector<8x128xbf16>
    %c0_4 = arith.constant 0 : index
    %c0_5 = arith.constant 0 : index
    %5 = vector.load %arg3[%c0_4, %c0_5] : memref<128x128xbf16, #tpu.memory_space<vmem>>, vector<128x128xbf16>
    %cst = arith.constant dense<0.000000e+00> : vector<8x128xf32>
    %6 = tpu.matmul %4, %5, %cst {dimension_numbers = #tpu.dot_dimension_numbers<[1], [0], [0], [1], [0, 0, 1, 1], [], []>} : vector<8x128xbf16>, vector<128x128xbf16>, vector<8x128xf32> -> vector<8x128xf32>
    %7 = arith.addf %3, %6 : vector<8x128xf32>
    %c0_6 = arith.constant 0 : index
    %c0_7 = arith.constant 0 : index
    %8 = vector.load %arg14[%c0_6, %c0_7] : memref<8x128xf32, #tpu.memory_space<vmem>>, vector<8x128xf32>
    tpu.vector_store %arg14[%c0_6, %c0_7], %7 {strides = array<i32>} : memref<8x128xf32, #tpu.memory_space<vmem>>, vector<8x128xf32>,
    %c3_i32 = arith.constant 3 : i32
    %9 = arith.cmpi eq, %arg1, %c3_i32 : i32
    %10 = arith.extui %9 : i1 to i32
    %c0_i32_8 = arith.constant 0 : i32
    %11 = arith.cmpi ne, %10, %c0_i32_8 : i32
    scf.if %11 {
      %c0_9 = arith.constant 0 : index
      %c0_10 = arith.constant 0 : index
      %12 = vector.load %arg14[%c0_9, %c0_10] : memref<8x128xf32, #tpu.memory_space<vmem>>, vector<8x128xf32>
      %c0_11 = arith.constant 0 : index
      %c0_12 = arith.constant 0 : index
      %13 = vector.load %arg4[%c0_11, %c0_12] : memref<1x128xf32, #tpu.memory_space<vmem>>, vector<1x128xf32>
      %14 = vector.broadcast %13 : vector<1x128xf32> to vector<8x128xf32>
      %15 = arith.addf %12, %14 : vector<8x128xf32>
      %16 = math.tanh %15 : vector<8x128xf32>
      %c0_13 = arith.constant 0 : index
      %c0_14 = arith.constant 0 : index
      %17 = vector.load %arg5[%c0_13, %c0_14] : memref<128x64xf32, #tpu.memory_space<vmem>>, vector<128x64xf32>
      %cst_15 = arith.constant dense<0.000000e+00> : vector<8x64xf32>
      %18 = tpu.matmul %16, %17, %cst_15 {dimension_numbers = #tpu.dot_dimension_numbers<[1], [0], [0], [1], [0, 0, 1, 1], [], []>} : vector<8x128xf32>, vector<128x64xf32>, vector<8x64xf32> -> vector<8x64xf32>
      %c0_16 = arith.constant 0 : index
      %c0_17 = arith.constant 0 : index
      %19 = vector.load %arg6[%c0_16, %c0_17] : memref<1x64xf32, #tpu.memory_space<vmem>>, vector<1x64xf32>
      %20 = vector.broadcast %19 : vector<1x64xf32> to vector<8x64xf32>
      %21 = arith.addf %18, %20 : vector<8x64xf32>
      %22 = math.tanh %21 : vector<8x64xf32>
      %c0_18 = arith.constant 0 : index
      %c0_19 = arith.constant 0 : index
      %23 = vector.load %arg7[%c0_18, %c0_19] : memref<64x128xf32, #tpu.memory_space<vmem>>, vector<64x128xf32>
      %cst_20 = arith.constant dense<0.000000e+00> : vector<8x128xf32>
      %24 = tpu.matmul %22, %23, %cst_20 {dimension_numbers = #tpu.dot_dimension_numbers<[1], [0], [0], [1], [0, 0, 1, 1], [], []>} : vector<8x64xf32>, vector<64x128xf32>, vector<8x128xf32> -> vector<8x128xf32>
      %c0_21 = arith.constant 0 : index
      %c0_22 = arith.constant 0 : index
      %25 = vector.load %arg8[%c0_21, %c0_22] : memref<1x128xf32, #tpu.memory_space<vmem>>, vector<1x128xf32>
      %26 = vector.broadcast %25 : vector<1x128xf32> to vector<8x128xf32>
      %27 = arith.addf %24, %26 : vector<8x128xf32>
      %c0_23 = arith.constant 0 : index
      %c0_24 = arith.constant 0 : index
      %28 = vector.load %arg9[%c0_23, %c0_24] : memref<64x128xf32, #tpu.memory_space<vmem>>, vector<64x128xf32>
      %cst_25 = arith.constant dense<0.000000e+00> : vector<8x128xf32>
      %29 = tpu.matmul %22, %28, %cst_25 {dimension_numbers = #tpu.dot_dimension_numbers<[1], [0], [0], [1], [0, 0, 1, 1], [], []>} : vector<8x64xf32>, vector<64x128xf32>, vector<8x128xf32> -> vector<8x128xf32>
      %c0_26 = arith.constant 0 : index
      %c0_27 = arith.constant 0 : index
      %30 = vector.load %arg10[%c0_26, %c0_27] : memref<1x128xf32, #tpu.memory_space<vmem>>, vector<1x128xf32>
      %31 = vector.broadcast %30 : vector<1x128xf32> to vector<8x128xf32>
      %32 = arith.addf %29, %31 : vector<8x128xf32>
      %c0_28 = arith.constant 0 : index
      %c0_29 = arith.constant 0 : index
      %33 = vector.load %arg11[%c0_28, %c0_29] : memref<128x128xf32, #tpu.memory_space<vmem>>, vector<128x128xf32>
      %cst_30 = arith.constant dense<0.000000e+00> : vector<8x128xf32>
      %34 = tpu.matmul %27, %33, %cst_30 {dimension_numbers = #tpu.dot_dimension_numbers<[1], [0], [0], [1], [0, 0, 1, 1], [], []>} : vector<8x128xf32>, vector<128x128xf32>, vector<8x128xf32> -> vector<8x128xf32>
      %c0_31 = arith.constant 0 : index
      %c0_32 = arith.constant 0 : index
      %35 = vector.load %arg12[%c0_31, %c0_32] : memref<1x128xf32, #tpu.memory_space<vmem>>, vector<1x128xf32>
      %36 = vector.broadcast %35 : vector<1x128xf32> to vector<8x128xf32>
      %37 = arith.addf %34, %36 : vector<8x128xf32>
      %cst_33 = arith.constant dense<0xFF800000> : vector<8xf32>
      %38 = vector.multi_reduction <maximumf>, %37, %cst_33 [1] : vector<8x128xf32> to vector<8xf32>
      %39 = vector.shape_cast %38 : vector<8xf32> to vector<8x1xf32>
      %40 = vector.broadcast %39 : vector<8x1xf32> to vector<8x128xf32>
      %41 = arith.subf %37, %40 : vector<8x128xf32>
      %42 = math.exp %41 : vector<8x128xf32>
      %cst_34 = arith.constant dense<0.000000e+00> : vector<8xf32>
      %43 = vector.multi_reduction <add>, %42, %cst_34 [1] : vector<8x128xf32> to vector<8xf32>
      %44 = vector.shape_cast %43 : vector<8xf32> to vector<8x1xf32>
      %45 = tpu.reciprocal %44 {approx = true} : vector<8x1xf32> -> vector<8x1xf32>
      %46 = vector.broadcast %45 : vector<8x1xf32> to vector<8x128xf32>
      %47 = arith.mulf %42, %46 : vector<8x128xf32>
      %48 = arith.mulf %27, %27 : vector<8x128xf32>
      %cst_35 = arith.constant 1.000000e+00 : f32
      %49 = vector.broadcast %cst_35 : f32 to vector<8x128xf32>
      %50 = arith.subf %49, %48 : vector<8x128xf32>
      %51 = arith.addf %50, %32 : vector<8x128xf32>
      %52 = math.exp %32 : vector<8x128xf32>
      %53 = arith.subf %51, %52 : vector<8x128xf32>
      %cst_36 = arith.constant dense<0.000000e+00> : vector<8xf32>
      %54 = vector.multi_reduction <add>, %53, %cst_36 [1] : vector<8x128xf32> to vector<8xf32>
      %55 = vector.shape_cast %54 : vector<8xf32> to vector<8x1xf32>
      %cst_37 = arith.constant -5.000000e-01 : f32
      %56 = vector.broadcast %cst_37 : f32 to vector<8x1xf32>
      %57 = arith.mulf %56, %55 : vector<8x1xf32>
      %58 = tpu.iota {dimensions = array<i32: 1>} : vector<8x128xi32>
      %c16_i32 = arith.constant 16 : i32
      %59 = vector.broadcast %c16_i32 : i32 to vector<8x128xi32>
      %60 = arith.cmpi slt, %58, %59 : vector<8x128xi32>
      %c16_i32_38 = arith.constant 16 : i32
      %61 = vector.broadcast %c16_i32_38 : i32 to vector<8x128xi32>
      %62 = arith.cmpi eq, %58, %61 : vector<8x128xi32>
      %63 = vector.shape_cast %57 : vector<8x1xf32> to vector<8x1xf32>
      %64 = vector.broadcast %63 : vector<8x1xf32> to vector<8x128xf32>
      %cst_39 = arith.constant 0.000000e+00 : f32
      %65 = vector.broadcast %cst_39 : f32 to vector<8x128xf32>
      %66 = arith.select %62, %64, %65 : vector<8x128xi1>, vector<8x128xf32>
      %67 = arith.select %60, %47, %66 : vector<8x128xi1>, vector<8x128xf32>
      %c0_40 = arith.constant 0 : index
      %c0_41 = arith.constant 0 : index
      %68 = vector.load %arg13[%c0_40, %c0_41] : memref<8x128xf32, #tpu.memory_space<vmem>>, vector<8x128xf32>
      tpu.vector_store %arg13[%c0_40, %c0_41], %67 {strides = array<i32>} : memref<8x128xf32, #tpu.memory_space<vmem>>, vector<8x128xf32>,
    } else {
    }
    return
  }
  func.func @transform_0(%arg0: i32, %arg1: i32) -> (i32, i32) {
    %c0_i32 = arith.constant 0 : i32
    return %arg0, %arg1 : i32, i32
  }
  func.func @transform_1(%arg0: i32, %arg1: i32) -> (i32, i32) {
    %c0_i32 = arith.constant 0 : i32
    %c0_i32_0 = arith.constant 0 : i32
    return %arg1, %c0_i32 : i32, i32
  }
  func.func @transform_2(%arg0: i32, %arg1: i32) -> (i32, i32) {
    %c0_i32 = arith.constant 0 : i32
    %c0_i32_0 = arith.constant 0 : i32
    %c0_i32_1 = arith.constant 0 : i32
    return %c0_i32, %c0_i32_0 : i32, i32
  }
  func.func @transform_3(%arg0: i32, %arg1: i32) -> (i32, i32) {
    %c0_i32 = arith.constant 0 : i32
    %c0_i32_0 = arith.constant 0 : i32
    %c0_i32_1 = arith.constant 0 : i32
    return %c0_i32, %c0_i32_0 : i32, i32
  }
  func.func @transform_4(%arg0: i32, %arg1: i32) -> (i32, i32) {
    %c0_i32 = arith.constant 0 : i32
    %c0_i32_0 = arith.constant 0 : i32
    %c0_i32_1 = arith.constant 0 : i32
    return %c0_i32, %c0_i32_0 : i32, i32
  }
  func.func @transform_5(%arg0: i32, %arg1: i32) -> (i32, i32) {
    %c0_i32 = arith.constant 0 : i32
    %c0_i32_0 = arith.constant 0 : i32
    %c0_i32_1 = arith.constant 0 : i32
    return %c0_i32, %c0_i32_0 : i32, i32
  }
  func.func @transform_6(%arg0: i32, %arg1: i32) -> (i32, i32) {
    %c0_i32 = arith.constant 0 : i32
    %c0_i32_0 = arith.constant 0 : i32
    %c0_i32_1 = arith.constant 0 : i32
    return %c0_i32, %c0_i32_0 : i32, i32
  }
  func.func @transform_7(%arg0: i32, %arg1: i32) -> (i32, i32) {
    %c0_i32 = arith.constant 0 : i32
    %c0_i32_0 = arith.constant 0 : i32
    %c0_i32_1 = arith.constant 0 : i32
    return %c0_i32, %c0_i32_0 : i32, i32
  }
  func.func @transform_8(%arg0: i32, %arg1: i32) -> (i32, i32) {
    %c0_i32 = arith.constant 0 : i32
    %c0_i32_0 = arith.constant 0 : i32
    %c0_i32_1 = arith.constant 0 : i32
    return %c0_i32, %c0_i32_0 : i32, i32
  }
  func.func @transform_9(%arg0: i32, %arg1: i32) -> (i32, i32) {
    %c0_i32 = arith.constant 0 : i32
    %c0_i32_0 = arith.constant 0 : i32
    %c0_i32_1 = arith.constant 0 : i32
    return %c0_i32, %c0_i32_0 : i32, i32
  }
  func.func @transform_10(%arg0: i32, %arg1: i32) -> (i32, i32) {
    %c0_i32 = arith.constant 0 : i32
    %c0_i32_0 = arith.constant 0 : i32
    %c0_i32_1 = arith.constant 0 : i32
    return %c0_i32, %c0_i32_0 : i32, i32
  }
  func.func @transform_11(%arg0: i32, %arg1: i32) -> (i32, i32) {
    %c0_i32 = arith.constant 0 : i32
    %c0_i32_0 = arith.constant 0 : i32
    return %arg0, %c0_i32 : i32, i32
  }
}

module attributes {stable_mosaic.version = 11 : i64} {
  func.func @_recon_kernel(%arg0: i32, %arg1: i32, %arg2: memref<8x128xf32, #tpu.memory_space<vmem>>, %arg3: memref<128x256xbf16, #tpu.memory_space<vmem>>, %arg4: memref<8x256xbf16, #tpu.memory_space<vmem>>, %arg5: memref<8x128xf32, #tpu.memory_space<vmem>>, %arg6: memref<8x128xf32, #tpu.memory_space<vmem>>) attributes {dimension_semantics = [#tpu.dimension_semantics<parallel>, #tpu.dimension_semantics<arbitrary>], iteration_bounds = array<i64: 2, 2>, scalar_prefetch = 0 : i64, scratch_operands = 1 : i64, tpu.core_type = #tpu.core_type<tc>, window_params = [{transform_indices = @transform_0, window_bounds = array<i64: 8, 128>}, {transform_indices = @transform_1, window_bounds = array<i64: 128, 256>}, {transform_indices = @transform_2, window_bounds = array<i64: 8, 256>}, {transform_indices = @transform_3, window_bounds = array<i64: 8, 128>}]} {
    %c0_i32 = arith.constant 0 : i32
    %0 = arith.cmpi eq, %arg1, %c0_i32 : i32
    %1 = arith.extui %0 : i1 to i32
    %c0_i32_0 = arith.constant 0 : i32
    %2 = arith.cmpi ne, %1, %c0_i32_0 : i32
    scf.if %2 {
      %cst_12 = arith.constant 0.000000e+00 : f32
      %22 = vector.broadcast %cst_12 : f32 to vector<8x128xf32>
      %c0_13 = arith.constant 0 : index
      %c0_14 = arith.constant 0 : index
      %23 = vector.load %arg6[%c0_13, %c0_14] : memref<8x128xf32, #tpu.memory_space<vmem>>, vector<8x128xf32>
      tpu.vector_store %arg6[%c0_13, %c0_14], %22 {strides = array<i32>} : memref<8x128xf32, #tpu.memory_space<vmem>>, vector<8x128xf32>,
    } else {
    }
    %c0 = arith.constant 0 : index
    %c0_1 = arith.constant 0 : index
    %3 = vector.load %arg2[%c0, %c0_1] : memref<8x128xf32, #tpu.memory_space<vmem>>, vector<8x128xf32>
    %4 = arith.truncf %3 : vector<8x128xf32> to vector<8x128xbf16>
    %c0_2 = arith.constant 0 : index
    %c0_3 = arith.constant 0 : index
    %5 = vector.load %arg3[%c0_2, %c0_3] : memref<128x256xbf16, #tpu.memory_space<vmem>>, vector<128x256xbf16>
    %cst = arith.constant dense<0.000000e+00> : vector<8x256xf32>
    %6 = tpu.matmul %4, %5, %cst {dimension_numbers = #tpu.dot_dimension_numbers<[1], [0], [0], [1], [0, 0, 1, 1], [], []>} : vector<8x128xbf16>, vector<128x256xbf16>, vector<8x256xf32> -> vector<8x256xf32>
    %c0_4 = arith.constant 0 : index
    %c0_5 = arith.constant 0 : index
    %7 = vector.load %arg4[%c0_4, %c0_5] : memref<8x256xbf16, #tpu.memory_space<vmem>>, vector<8x256xbf16>
    %8 = arith.extf %7 : vector<8x256xbf16> to vector<8x256xf32>
    %cst_6 = arith.constant 1.000000e-10 : f32
    %9 = vector.broadcast %cst_6 : f32 to vector<8x256xf32>
    %10 = arith.addf %6, %9 : vector<8x256xf32>
    %11 = math.log %10 : vector<8x256xf32>
    %12 = arith.mulf %8, %11 : vector<8x256xf32>
    %13 = vector.extract_strided_slice %12 {offsets = [0, 0], sizes = [8, 128], strides = [1, 1]} : vector<8x256xf32> to vector<8x128xf32>
    %14 = vector.extract_strided_slice %12 {offsets = [0, 128], sizes = [8, 128], strides = [1, 1]} : vector<8x256xf32> to vector<8x128xf32>
    %15 = arith.addf %13, %14 : vector<8x128xf32>
    %c0_7 = arith.constant 0 : index
    %c0_8 = arith.constant 0 : index
    %16 = vector.load %arg6[%c0_7, %c0_8] : memref<8x128xf32, #tpu.memory_space<vmem>>, vector<8x128xf32>
    %17 = arith.addf %16, %15 : vector<8x128xf32>
    %c0_9 = arith.constant 0 : index
    %c0_10 = arith.constant 0 : index
    %18 = vector.load %arg6[%c0_9, %c0_10] : memref<8x128xf32, #tpu.memory_space<vmem>>, vector<8x128xf32>
    tpu.vector_store %arg6[%c0_9, %c0_10], %17 {strides = array<i32>} : memref<8x128xf32, #tpu.memory_space<vmem>>, vector<8x128xf32>,
    %c1_i32 = arith.constant 1 : i32
    %19 = arith.cmpi eq, %arg1, %c1_i32 : i32
    %20 = arith.extui %19 : i1 to i32
    %c0_i32_11 = arith.constant 0 : i32
    %21 = arith.cmpi ne, %20, %c0_i32_11 : i32
    scf.if %21 {
      %c0_12 = arith.constant 0 : index
      %c0_13 = arith.constant 0 : index
      %22 = vector.load %arg6[%c0_12, %c0_13] : memref<8x128xf32, #tpu.memory_space<vmem>>, vector<8x128xf32>
      %cst_14 = arith.constant dense<0.000000e+00> : vector<8xf32>
      %23 = vector.multi_reduction <add>, %22, %cst_14 [1] : vector<8x128xf32> to vector<8xf32>
      %24 = vector.shape_cast %23 : vector<8xf32> to vector<8x1xf32>
      %cst_15 = arith.constant 0.000000e+00 : f32
      %25 = vector.broadcast %cst_15 : f32 to vector<8x1xf32>
      %26 = arith.subf %25, %24 : vector<8x1xf32>
      %27 = vector.shape_cast %26 : vector<8x1xf32> to vector<8x1xf32>
      %28 = vector.broadcast %27 : vector<8x1xf32> to vector<8x128xf32>
      %c0_16 = arith.constant 0 : index
      %c0_17 = arith.constant 0 : index
      %29 = vector.load %arg5[%c0_16, %c0_17] : memref<8x128xf32, #tpu.memory_space<vmem>>, vector<8x128xf32>
      tpu.vector_store %arg5[%c0_16, %c0_17], %28 {strides = array<i32>} : memref<8x128xf32, #tpu.memory_space<vmem>>, vector<8x128xf32>,
    } else {
    }
    return
  }
  func.func @transform_0(%arg0: i32, %arg1: i32) -> (i32, i32) {
    %c0_i32 = arith.constant 0 : i32
    %c0_i32_0 = arith.constant 0 : i32
    return %arg0, %c0_i32 : i32, i32
  }
  func.func @transform_1(%arg0: i32, %arg1: i32) -> (i32, i32) {
    %c0_i32 = arith.constant 0 : i32
    %c0_i32_0 = arith.constant 0 : i32
    return %c0_i32, %arg1 : i32, i32
  }
  func.func @transform_2(%arg0: i32, %arg1: i32) -> (i32, i32) {
    %c0_i32 = arith.constant 0 : i32
    return %arg0, %arg1 : i32, i32
  }
  func.func @transform_3(%arg0: i32, %arg1: i32) -> (i32, i32) {
    %c0_i32 = arith.constant 0 : i32
    %c0_i32_0 = arith.constant 0 : i32
    return %arg0, %c0_i32 : i32, i32
  }
}

</mosaic_0001>

<bundles_post_ra>
// kernel: gsm_forward.2
= control target key start
LH: loop header
LB: loop body
LE: loop exit
PB: predicated region body
PF: predicated region fallthrough
CT: control target
= control target key end

     0   :  { %s996_s17 = smov 0   ;;  %s998_s18 = smov 0   ;;  %s1219_s0 = inlined_call_operand.vmem [shape: bf16[16,512], index: 0, kind: input, shape index: {}]   ;;  %s1220_s1 = inlined_call_operand.vmem [shape: bf16[512,128], index: 1, kind: input, shape index: {}]   ;;  %s1221_s2 = inlined_call_operand.vmem [shape: f32[1,128], index: 2, kind: input, shape index: {}]   ;;  %s1222_s3 = inlined_call_operand.vmem [shape: f32[128,64], index: 3, kind: input, shape index: {}]   ;;  %s1223_s4 = inlined_call_operand.vmem [shape: f32[1,64], index: 4, kind: input, shape index: {}]   ;;  %s1224_s5 = inlined_call_operand.vmem [shape: f32[64,128], index: 5, kind: input, shape index: {}]   ;;  %s1225_s6 = inlined_call_operand.vmem [shape: f32[1,128], index: 6, kind: input, shape index: {}]   ;;  %s1226_s7 = inlined_call_operand.vmem [shape: f32[64,128], index: 7, kind: input, shape index: {}]   ;;  %s1227_s8 = inlined_call_operand.vmem [shape: f32[1,128], index: 8, kind: input, shape index: {}]   ;;  %s1228_s9 = inlined_call_operand.vmem [shape: f32[128,128], index: 9, kind: input, shape index: {}]   ;;  %s1229_s10 = inlined_call_operand.vmem [shape: f32[1,128], index: 10, kind: input, shape index: {}]   ;;  %s1230_s11 = inlined_call_operand.vmem [shape: f32[16,128], index: 11, kind: output, shape index: {}]  }
   0x1   :  { %s1000_s19 = smov 0   ;;  %s1002_s20 = smov 0  }
   0x2   :  { %s1004_s21 = smov 0  }
   0x3 LB: > { %1233 = sst [smem:[#allocation3_spill]] %s925_s19  ;;  %s30_s22 = sadd.s32 1, %s925_s19  ;;  %s933_s21 = sphi %s1004_s21, %s21_s21   ;;  %s929_s20 = sphi %s1002_s20, %s1240_s20   ;;  %s925_s19 = sphi %s1000_s19, %s1239_s19   ;;  %s921_s18 = sphi %s998_s18, %s1238_s18   ;;  %s917_s17 = sphi %s996_s17, %s1237_s17  }
   0x4   : > { %1234 = sst [smem:[#allocation4_spill]] %s929_s20  ;;  %s33_s23 = sadd.s32 1, %s929_s20 }
   0x5   : > { %p31_p0 = scmp.ge.s32.totalorder %s30_s22, 4  ;;  %p787_p1 = scmp.ge.s32.totalorder %s933_s21, 1 }
   0x6   : > { %p365_p2 = scmp.lt.s32.totalorder %s933_s21, 9 }
   0x7   : > { %s1242_s22 = smov (%p31_p0, %s30_s22), 0  ;;  %s1244_s23 = smov (!%p31_p0, %s33_s23), %s929_s20 }
   0x8   : > { %1235 = sst [smem:[#allocation5_spill]] %s1242_s22  ;;  %p366_p3 = pnand %p787_p1, %p365_p2 }
   0x9   : > { %p35_p4 = scmp.ge.s32.totalorder %s1244_s23, 2  ;;  %p412_p5 = scmp.lt.s32.totalorder (!%p366_p3), %s921_s18, 1 }
   0xa   : > { %369 = sbr.rel (%p366_p3) target bundleno = 877 (0x36d), region = 64  ;;  %p414_p6 = scmp.lt.s32.totalorder (!%p366_p3), %s917_s17, 3 }
   0xb   : > { %s1246_s23 = smov (%p35_p4, %s1244_s23), 0  ;;  %s790_s24 = sshll.u32 (!%p366_p3), %s917_s17, 4 }
   0xc   : > { %1236 = sst [smem:[#allocation6_spill]] %s1246_s23  ;;  %p421_p7 = scmp.lt.s32.totalorder (!%p366_p3), %s790_s24, 63 }
   0xd   : > { %p793_p8 = scmp.ne.s32.totalorder (!%p366_p3), %s917_s17, 0 }
   0xf   : > { %s1248_s18 = smov (!%p412_p5, %s921_s18), 1  ;;  %s1250_s24 = smov (!%p421_p7, %s790_s24), 63 }
  0x10   : > { %s415_s25 = scalar_select %p414_p6, %s917_s17, 3 }
  0x11   : > { %s788_s26 = sshll.u32 %s1248_s18, 2  ;;  %s792_s28 = sshll.u32 %s1248_s18, 3 }
  0x12   : > { %s417_s27 = sadd.s32 %s788_s26, %s415_s25  ;;  %s1034_s13 = scalar_lea.vmem %s1230_s11, %s792_s28 }
  0x13   : > { %s789_s29 = sshll.u32 %s417_s27, 2  ;;  %s791_s23 = sshll.u32 %s1250_s24, 2 }
  0x14   : > { %s419_s16 = scalar_lea.vmem %s1219_s0, %s789_s29  ;;  %s424_s19 = scalar_lea.vmem %s1220_s1, %s791_s23 }
  0x15   : > { %433 = sbr.rel (%p793_p8) target bundleno = 28 (0x1c), region = 68 }
  0x1a   : > { %v935_v0 = vmov 0.0  }
  0x1b   : > { %434 = vst [vmem:[#allocation2] sm:$0xff] %v935_v0 }
  0x1c PF: > { %v838_v1 = vld [vmem:[%s424_s19 + $0x38] sm:$0xff]  ;;  %v837_v2 = vld [vmem:[%s424_s19 + $0x30] sm:$0xff]  ;;  %v836_v3 = vld [vmem:[%s424_s19 + $0x28] sm:$0xff]  ;;  %p826_p9 = scmp.ne.s32.totalorder %s917_s17, 3 }
  0x1d   : > { %501 = vmatpush.bf16.msra.mxu0 %v838_v1  ;;  %v835_v4 = vld [vmem:[%s424_s19 + $0x20] sm:$0xff]  ;;  %v834_v5 = vld [vmem:[%s424_s19 + $0x18] sm:$0xff]  ;;  %v833_v6 = vld [vmem:[%s424_s19 + $0x10] sm:$0xff] }
  0x1e   : > { %v832_v7 = vld [vmem:[%s424_s19 + $0x8] sm:$0xff]  ;;  %v831_v8 = vld [vmem:[%s424_s19] sm:$0xff] }
  0x1f   : > { %v436_v9 = vld [vmem:[%s419_s16] sm:$0xf] }
  0x21   : > { %502 = vmatpush.bf16.msra.mxu0 %v837_v2 }
  0x22   : > { %v435_v10 = vld [vmem:[#allocation2] sm:$0xff] }
  0x25   : > { %503 = vmatpush.bf16.msra.mxu0 %v836_v3 }
  0x29   : > { %504 = vmatpush.bf16.msra.mxu0 %v835_v4 }
  0x2d   : > { %505 = vmatpush.bf16.msra.mxu0 %v834_v5 }
  0x31   : > { %506 = vmatpush.bf16.msra.mxu0 %v833_v6 }
  0x35   : > { %507 = vmatpush.bf16.msra.mxu0 %v832_v7 }
  0x39   : > { %508 = vmatpush.bf16.msra.mxu0 %v831_v8 }
  0x3c   : > { %509 = vmatmul.bf16.vlgmr.msra.gmra.mxu0 %v436_v9 }
  0xb9   : > { %v510_v11 = vpop.f32.mrf.mxu0 }
  0xba   : > { %v514_v12 = vadd.f32 %v510_v11, %v435_v10 }
  0xbc   : > { %515 = vst [vmem:[#allocation2] sm:$0xff] %v514_v12 }
  0xbd   : > { %519 = sbr.rel (%p826_p9) target bundleno = 877 (0x36d), region = 72 }
  0xc1   : > { %v512_v13 = vpop.f32.mrf.mxu0 }
  0xc2   : > { %v542_v14 = vld [vmem:[%s1222_s3 + $0x78] sm:$0xff]  ;;  %v541_v15 = vld [vmem:[%s1222_s3 + $0x70] sm:$0xff]  ;;  %v540_v16 = vld [vmem:[%s1222_s3 + $0x68] sm:$0xff]  ;;  %vm580_vm0 = vcmask 523264  }
  0xc3   : > { %547 = vmatpush.msra.mxu0 %v542_v14  ;;  %v539_v17 = vld [vmem:[%s1222_s3 + $0x60] sm:$0xff]  ;;  %v538_v18 = vld [vmem:[%s1222_s3 + $0x58] sm:$0xff]  ;;  %v537_v21 = vld [vmem:[%s1222_s3 + $0x50] sm:$0xff] }
  0xc4   : > { %v575_v19 = vld [vmem:[%s1224_s5 + $0x38] sm:$0xff]  ;;  %v574_v22 = vld [vmem:[%s1224_s5 + $0x30] sm:$0xff]  ;;  %v573_v24 = vld [vmem:[%s1224_s5 + $0x28] sm:$0xff] }
  0xc5   : > { %548 = vmatpush.msra.mxu0 %v541_v15  ;;  %v611_v20 = vld [vmem:[%s1226_s7 + $0x38] sm:$0xff]  ;;  %592 = vmatpush.msra.mxu1 %v575_v19  ;;  %v610_v23 = vld [vmem:[%s1226_s7 + $0x30] sm:$0xff]  ;;  %v609_v25 = vld [vmem:[%s1226_s7 + $0x28] sm:$0xff] }
  0xc6   : > { %624 = vmatpush.msra.mxu2 %v611_v20  ;;  %v536_v26 = vld [vmem:[%s1222_s3 + $0x48] sm:$0xff]  ;;  %v535_v27 = vld [vmem:[%s1222_s3 + $0x40] sm:$0xff]  ;;  %v534_v28 = vld [vmem:[%s1222_s3 + $0x38] sm:$0xff] }
  0xc7   : > { %549 = vmatpush.msra.mxu0 %v540_v16  ;;  %593 = vmatpush.msra.mxu1 %v574_v22  ;;  %v880_v29 = vld [vmem:[%s1221_s2] ss:$0 sm:$0xff]  ;;  %v533_v30 = vld [vmem:[%s1222_s3 + $0x30] sm:$0xff]  ;;  %v532_v32 = vld [vmem:[%s1222_s3 + $0x28] sm:$0xff] }
  0xc8   : > { %625 = vmatpush.msra.mxu2 %v610_v23  ;;  %v520_v31 = vld [vmem:[#allocation2] sm:$0xff]  ;;  %v530_v35 = vld [vmem:[%s1222_s3 + $0x18] sm:$0xff]  ;;  %v529_v36 = vld [vmem:[%s1222_s3 + $0x10] sm:$0xff] }
  0xc9   : > { %550 = vmatpush.msra.mxu0 %v539_v17  ;;  %594 = vmatpush.msra.mxu1 %v573_v24  ;;  %v525_v33 = vadd.f32 %v880_v29, %v520_v31  ;;  %v531_v34 = vld [vmem:[%s1222_s3 + $0x20] sm:$0xff]  ;;  %v528_v37 = vld [vmem:[%s1222_s3 + $0x8] sm:$0xff]  ;;  %v571_v42 = vld [vmem:[%s1224_s5 + $0x18] sm:$0xff] }
  0xca   : > { %626 = vmatpush.msra.mxu2 %v609_v25  ;;  %v527_v38 = vld [vmem:[%s1222_s3] sm:$0xff]  ;;  %v607_v43 = vld [vmem:[%s1226_s7 + $0x18] sm:$0xff]  ;;  %v570_v44 = vld [vmem:[%s1224_s5 + $0x10] sm:$0xff]  ;;  %v694_v25 = vlaneseq }
  0xcb   : > { %551 = vmatpush.msra.mxu0 %v538_v18  ;;  %885 = vtanh.f32 %v525_v33  ;;  %v572_v40 = vld [vmem:[%s1224_s5 + $0x20] sm:$0xff]  ;;  %v606_v45 = vld [vmem:[%s1226_s7 + $0x10] sm:$0xff]  ;;  %v569_v46 = vld [vmem:[%s1224_s5 + $0x8] sm:$0xff] }
  0xcc   : > { %v608_v41 = vld [vmem:[%s1226_s7 + $0x20] sm:$0xff]  ;;  %595 = vmatpush.msra.mxu1 %v572_v40  ;;  %v605_v47 = vld [vmem:[%s1226_s7 + $0x8] sm:$0xff]  ;;  %v651_v50 = vld [vmem:[%s1228_s9 + $0x78] sm:$0xff] }
  0xcd   : > { %552 = vmatpush.msra.mxu0 %v537_v21  ;;  %627 = vmatpush.msra.mxu2 %v608_v41  ;;  %v568_v48 = vld [vmem:[%s1224_s5] sm:$0xff]  ;;  %v650_v51 = vld [vmem:[%s1228_s9 + $0x70] sm:$0xff]  ;;  %v649_v52 = vld [vmem:[%s1228_s9 + $0x68] sm:$0xff] }
  0xce   : > { %596 = vmatpush.msra.mxu1 %v571_v42  ;;  %v604_v49 = vld [vmem:[%s1226_s7] sm:$0xff]  ;;  %656 = vmatpush.msra.mxu3 %v651_v50  ;;  %v647_v54 = vld [vmem:[%s1228_s9 + $0x58] sm:$0xff]  ;;  %v646_v55 = vld [vmem:[%s1228_s9 + $0x50] sm:$0xff] }
  0xcf   : > { %553 = vmatpush.msra.mxu0 %v536_v26  ;;  %628 = vmatpush.msra.mxu2 %v607_v43  ;;  %v648_v53 = vld [vmem:[%s1228_s9 + $0x60] sm:$0xff]  ;;  %v645_v56 = vld [vmem:[%s1228_s9 + $0x48] sm:$0xff]  ;;  %v643_v58 = vld [vmem:[%s1228_s9 + $0x38] sm:$0xff] }
  0xd0   : > { %597 = vmatpush.msra.mxu1 %v570_v44  ;;  %657 = vmatpush.msra.mxu3 %v650_v51  ;;  %v644_v57 = vld [vmem:[%s1228_s9 + $0x40] sm:$0xff]  ;;  %v642_v59 = vld [vmem:[%s1228_s9 + $0x30] sm:$0xff]  ;;  %v641_v60 = vld [vmem:[%s1228_s9 + $0x28] sm:$0xff] }
  0xd1   : > { %554 = vmatpush.msra.mxu0 %v535_v27  ;;  %v886_v39 = vpop.eup %885  ;;  %629 = vmatpush.msra.mxu2 %v606_v45  ;;  %v881_v61 = vld [vmem:[%s1223_s4] ss:$0 sm:$0xff]  ;;  %v639_v0 = vld [vmem:[%s1228_s9 + $0x18] sm:$0xff]  ;;  %v638_v2 = vld [vmem:[%s1228_s9 + $0x10] sm:$0xff]  ;;  %v695_v27 = vand.u32 127, %v694_v25 }
  0xd2   : > { %598 = vmatpush.msra.mxu1 %v569_v46  ;;  %658 = vmatpush.msra.mxu3 %v649_v52  ;;  %v640_v62 = vld [vmem:[%s1228_s9 + $0x20] sm:$0xff]  ;;  %v637_v4 = vld [vmem:[%s1228_s9 + $0x8] sm:$0xff] }
  0xd3   : > { %555 = vmatpush.msra.mxu0 %v534_v28  ;;  %630 = vmatpush.msra.mxu2 %v605_v47  ;;  %v636_v5 = vld [vmem:[%s1228_s9] sm:$0xff]  ;;  %vm697_vm1 = vcmp.eq.s32.totalorder %v695_v27, 16  ;;  %vm696_vm2 = vcmp.lt.s32.totalorder %v695_v27, 16 }
  0xd4   : > { %599 = vmatpush.msra.mxu1 %v568_v48  ;;  %659 = vmatpush.msra.mxu3 %v648_v53  ;;  %v882_v6 = vld [vmem:[%s1225_s6] ss:$0 sm:$0xff] }
  0xd5   : > { %556 = vmatpush.msra.mxu0 %v533_v30  ;;  %631 = vmatpush.msra.mxu2 %v604_v49  ;;  %v883_v9 = vld [vmem:[%s1227_s8] ss:$0 sm:$0xff] }
  0xd6   : > { %660 = vmatpush.msra.mxu3 %v647_v54  ;;  %v884_v18 = vld [vmem:[%s1229_s10] ss:$0 sm:$0xff] }
  0xd7   : > { %557 = vmatpush.msra.mxu0 %v532_v32 }
  0xd8   : > { %661 = vmatpush.msra.mxu3 %v646_v55 }
  0xd9   : > { %558 = vmatpush.msra.mxu0 %v531_v34 }
  0xda   : > { %662 = vmatpush.msra.mxu3 %v645_v56 }
  0xdb   : > { %559 = vmatpush.msra.mxu0 %v530_v35 }
  0xdc   : > { %663 = vmatpush.msra.mxu3 %v644_v57 }
  0xdd   : > { %560 = vmatpush.msra.mxu0 %v529_v36 }
  0xde   : > { %664 = vmatpush.msra.mxu3 %v643_v58 }
  0xdf   : > { %561 = vmatpush.msra.mxu0 %v528_v37 }
  0xe0   : > { %665 = vmatpush.msra.mxu3 %v642_v59 }
  0xe1   : > { %562 = vmatpush.msra.mxu0 %v527_v38 }
  0xe2   : > { %563 = vmatmul.f32.vlgmr.msra.gmra.mxu0 %v886_v39  ;;  %666 = vmatpush.msra.mxu3 %v641_v60 }
  0xe4   : > { %667 = vmatpush.msra.mxu3 %v640_v62 }
  0xe6   : > { %668 = vmatpush.msra.mxu3 %v639_v0 }
  0xe8   : > { %669 = vmatpush.msra.mxu3 %v638_v2 }
  0xea   : > { %670 = vmatpush.msra.mxu3 %v637_v4 }
  0xec   : > { %671 = vmatpush.msra.mxu3 %v636_v5 }
 0x15f   : > { %v564_v63 = vpop.f32.mrf.mxu0 }
 0x160   : > { %v565_v1 = vadd.f32 %v881_v61, %v564_v63 }
 0x162   : > { %887 = vtanh.f32 %v565_v1 }
 0x168   : > { %v888_v3 = vpop.eup %887 }
 0x169   : > { %827 = vmatmul.msk.f32.vlgmr.msra.gmra.mxu1 %vm580_vm0, %v888_v3  ;;  %828 = vmatmul.msk.f32.vlgmr.msra.gmra.mxu2 %vm580_vm0, %v888_v3 }
 0x1e6   : > { %v601_v7 = vpop.f32.mrf.mxu1 }
 0x1e7   : > { %v602_v8 = vadd.f32 %v882_v6, %v601_v7 }
 0x1e9   : > { %672 = vmatmul.f32.vlgmr.msra.gmra.mxu3 %v602_v8  ;;  %v685_v13 = vmul.f32 %v602_v8, %v602_v8 }
 0x1eb   : > { %v686_v14 = vsub.f32 1.0, %v685_v13 }
 0x1ec   : > { %v633_v10 = vpop.f32.mrf.mxu2 }
 0x1ed   : > { %v634_v11 = vadd.f32 %v883_v9, %v633_v10 }
 0x1ef   : > { %v688_v12 = vmul.f32 1.442695, %v634_v11  ;;  %v687_v15 = vadd.f32 %v686_v14, %v634_v11 }
 0x1f1   : > { %889 = vpow2.f32 %v688_v12 }
 0x1f7   : > { %v890_v16 = vpop.eup %889 }
 0x1f8   : > { %v690_v17 = vsub.f32 %v687_v15, %v890_v16 }
 0x1fa   : > { %691 = vadd.xlane.f32.xlu1 %v690_v17 }
 0x26c   : > { %v673_v19 = vpop.f32.mrf.mxu3 }
 0x26d   : > { %v674_v20 = vadd.f32 %v884_v18, %v673_v19  ;;  %v692_v28 = vpop.xlane.xlu1 %691 }
 0x26e   : > { %v693_v29 = vmul.f32 -0.5, %v692_v28 }
 0x26f   : > { %676 = vmax.xlane.f32.xlu0 %v674_v20 }
 0x270   : > { %v698_v32 = vsel %vm697_vm1, %v693_v29, 0.0 }
 0x2e2   : > { %v677_v21 = vpop.xlane.xlu0 %676 }
 0x2e3   : > { %v678_v22 = vsub.f32 %v674_v20, %v677_v21 }
 0x2e5   : > { %v679_v23 = vmul.f32 1.442695, %v678_v22 }
 0x2e7   : > { %891 = vpow2.f32 %v679_v23 }
 0x2ed   : > { %v892_v24 = vpop.eup %891 }
 0x2ee   : > { %681 = vadd.xlane.f32.xlu0 %v892_v24 }
 0x361   : > { %v682_v26 = vpop.xlane.xlu0 %681 }
 0x362   : > { %893 = vrcp.f32 %v682_v26 }
 0x368   : > { %v894_v30 = vpop.eup %893 }
 0x369   : > { %v684_v31 = vmul.f32 %v894_v30, %v892_v24 }
 0x36b   : > { %v699_v33 = vsel %vm696_vm2, %v684_v31, %v698_v32 }
 0x36c   : > { %700 = vst [vmem:[%s1034_s13] sm:$0xff] %v699_v33 }
 0x36d PF: > { %s21_s21 = sadd.s32 1, %s933_s21   ;;  %s1237_s17 = sld [smem:[#allocation3_spill]] }
 0x36e   : > { %p18_p10 = scmp.ge.s32.totalorder %s21_s21, 10   ;;  %s1238_s18 = sld [smem:[#allocation4_spill]] }
 0x36f   : > { %s1239_s19 = sld [smem:[#allocation5_spill]] }
 0x370   : > { %s1240_s20 = sld [smem:[#allocation6_spill]]  ;;  %20 = sbr.rel (!%p18_p10) target bundleno = 3 (0x3), region = 105 }

// kernel: gsm_forward.3
= control target key start
LH: loop header
LB: loop body
LE: loop exit
PB: predicated region body
PF: predicated region fallthrough
CT: control target
= control target key end

     0   :  { %s819_s12 = smov 0   ;;  %s821_s13 = smov 0   ;;  %s975_s0 = inlined_call_operand.vmem [shape: f32[16,128], index: 0, kind: input, shape index: {}]   ;;  %s976_s1 = inlined_call_operand.vmem [shape: bf16[128,512], index: 1, kind: input, shape index: {}]   ;;  %s977_s2 = inlined_call_operand.vmem [shape: bf16[16,512], index: 2, kind: input, shape index: {}]   ;;  %s978_s3 = inlined_call_operand.vmem [shape: f32[16,128], index: 3, kind: output, shape index: {}]  }
   0x1   :  { %s823_s14 = smov 0   ;;  %s825_s15 = smov 0  }
   0x2   :  { %s827_s16 = smov 0   ;;  %s829_s17 = smov 0  }
   0x3   :  { %s831_s18 = smov 0  }
   0x4 LB: > { %s22_s19 = sadd.s32 1, %s788_s16  ;;  %s25_s20 = sadd.s32 1, %s792_s17  ;;  %s796_s18 = sphi %s831_s18, %s13_s18   ;;  %s792_s17 = sphi %s829_s17, %s984_s17   ;;  %s788_s16 = sphi %s827_s16, %s983_s16   ;;  %s784_s15 = sphi %s825_s15, %s982_s15   ;;  %s780_s14 = sphi %s823_s14, %s981_s14   ;;  %s776_s13 = sphi %s821_s13, %s980_s13   ;;  %s772_s12 = sphi %s819_s12, %s979_s12  }
   0x5   : > { %p23_p0 = scmp.ge.s32.totalorder %s22_s19, 2  ;;  %s58_s21 = sadd.s32 1, %s776_s13 }
   0x6   : > { %p65_p1 = scmp.ne.s32.totalorder %s776_s13, %s772_s12  ;;  %p66_p2 = scmp.eq.s32.totalorder %s796_s18, 0 }
   0x7   : > { %s986_s19 = smov (%p23_p0, %s22_s19), 0  ;;  %s988_s20 = smov (!%p23_p0, %s25_s20), %s792_s17 }
   0x8   : > { %s55_s22 = ssub.s32 %s788_s16, %s986_s19  ;;  %p67_p3 = por %p66_p2, %p65_p1 }
   0x9   : > { %p27_p4 = scmp.ge.s32.totalorder %s988_s20, 2  ;;  %p56_p5 = scmp.eq.s32.totalorder %s55_s22, 0 }
   0xa   : > { %p585_p6 = scmp.ge.s32.totalorder %s796_s18, 4 }
   0xb   : > { %s990_s20 = smov (%p27_p4, %s988_s20), 0 }
   0xc   : > { %s868_s23 = scalar_select %p56_p5, %s776_s13, %s58_s21  }
   0xd   : > { %145 = sbr.rel (%p585_p6) target bundleno = 38 (0x26), region = 16 }
  0x12   : > { %155 = sbr.rel (!%p67_p3) target bundleno = 38 (0x26), region = 24  ;;  %s157_s24 = sand.u32 (%p67_p3), 1, %s776_s13  }
  0x13   : > { %s664_s25 = sshll.u32 (%p67_p3), %s788_s16, 3  ;;  %s586_s26 = sshll.u32 (%p67_p3), %s157_s24, 7 }
  0x14   : > { %s876_s29 = scalar_lea.vmem (%p67_p3), %s976_s1, %s664_s25  ;;  %s159_s30 = scalar_lea.vmem (%p67_p3), [#allocation3], %s586_s26 }
  0x15   : > { %v221_v0 = vld [vmem:[%s876_s29] sm:$0xff] (%p67_p3)  ;;  %v223_v1 = vld [vmem:[%s876_s29 + $0x10] sm:$0xff] (%p67_p3) }
  0x16   : > { %v225_v2 = vld [vmem:[%s876_s29 + $0x20] sm:$0xff] (%p67_p3)  ;;  %222 = vst [vmem:[%s159_s30] sm:$0xff] (%p67_p3), %v221_v0  ;;  %v227_v3 = vld [vmem:[%s876_s29 + $0x30] sm:$0xff] (%p67_p3) }
  0x17   : > { %224 = vst [vmem:[%s159_s30 + $0x8] sm:$0xff] %v223_v1  ;;  %v229_v4 = vld [vmem:[%s876_s29 + $0x40] sm:$0xff]  ;;  %v231_v5 = vld [vmem:[%s876_s29 + $0x50] sm:$0xff] }
  0x18   : > { %226 = vst [vmem:[%s159_s30 + $0x10] sm:$0xff] %v225_v2  ;;  %v233_v6 = vld [vmem:[%s876_s29 + $0x60] sm:$0xff]  ;;  %v235_v7 = vld [vmem:[%s876_s29 + $0x70] sm:$0xff] }
  0x19   : > { %228 = vst [vmem:[%s159_s30 + $0x18] sm:$0xff] %v227_v3  ;;  %v237_v8 = vld [vmem:[%s876_s29 + $0x80] sm:$0xff]  ;;  %v239_v9 = vld [vmem:[%s876_s29 + $0x90] sm:$0xff] }
  0x1a   : > { %230 = vst [vmem:[%s159_s30 + $0x20] sm:$0xff] %v229_v4  ;;  %v241_v10 = vld [vmem:[%s876_s29 + $0xa0] sm:$0xff]  ;;  %v243_v11 = vld [vmem:[%s876_s29 + $0xb0] sm:$0xff] }
  0x1b   : > { %232 = vst [vmem:[%s159_s30 + $0x28] sm:$0xff] %v231_v5  ;;  %v245_v12 = vld [vmem:[%s876_s29 + $0xc0] sm:$0xff]  ;;  %v247_v13 = vld [vmem:[%s876_s29 + $0xd0] sm:$0xff] }
  0x1c   : > { %234 = vst [vmem:[%s159_s30 + $0x30] sm:$0xff] %v233_v6  ;;  %v249_v14 = vld [vmem:[%s876_s29 + $0xe0] sm:$0xff]  ;;  %v251_v15 = vld [vmem:[%s876_s29 + $0xf0] sm:$0xff] }
  0x1d   : > { %236 = vst [vmem:[%s159_s30 + $0x38] sm:$0xff] %v235_v7 }
  0x1e   : > { %238 = vst [vmem:[%s159_s30 + $0x40] sm:$0xff] %v237_v8 }
  0x1f   : > { %240 = vst [vmem:[%s159_s30 + $0x48] sm:$0xff] %v239_v9 }
  0x20   : > { %242 = vst [vmem:[%s159_s30 + $0x50] sm:$0xff] %v241_v10 }
  0x21   : > { %244 = vst [vmem:[%s159_s30 + $0x58] sm:$0xff] %v243_v11 }
  0x22   : > { %246 = vst [vmem:[%s159_s30 + $0x60] sm:$0xff] %v245_v12 }
  0x23   : > { %248 = vst [vmem:[%s159_s30 + $0x68] sm:$0xff] %v247_v13 }
  0x24   : > { %250 = vst [vmem:[%s159_s30 + $0x70] sm:$0xff] %v249_v14 }
  0x25   : > { %252 = vst [vmem:[%s159_s30 + $0x78] sm:$0xff] %v251_v15 }
  0x26 PF: > { %p589_p7 = scmp.ge.s32.totalorder %s796_s18, 1  ;;  %p270_p8 = scmp.lt.s32.totalorder %s796_s18, 5 }
  0x28   : > { %p271_p9 = pnand %p589_p7, %p270_p8 }
  0x29   : > { %s277_s4 = sand.u32 (!%p271_p9), 1, %s772_s12   ;;  %p312_p10 = scmp.lt.s32.totalorder (!%p271_p9), %s784_s15, 1 }
  0x2a   : > { %274 = sbr.rel (%p271_p9) target bundleno = 363 (0x16b), region = 66  ;;  %s590_s5 = sshll.u32 (!%p271_p9), %s277_s4, 7 }
  0x2b   : > { %s592_s6 = sshll.u32 (!%p271_p9), %s780_s14, 1  ;;  %s915_s29 = scalar_lea.vmem (!%p271_p9), [#allocation3], %s590_s5 }
  0x2c   : > { %p320_p11 = scmp.lt.s32.totalorder (!%p271_p9), %s592_s6, 3  ;;  %p596_p12 = scmp.ne.s32.totalorder (!%p271_p9), %s780_s14, 0 }
  0x2f   : > { %s992_s15 = smov (!%p312_p10, %s784_s15), 1  ;;  %s994_s6 = smov (!%p320_p11, %s592_s6), 3 }
  0x30   : > { %s591_s7 = sshll.u32 %s992_s15, 3  ;;  %s593_s8 = sshll.u32 %s992_s15, 2 }
  0x31   : > { %s903_s11 = scalar_lea.vmem %s975_s0, %s591_s7  ;;  %s323_s21 = sadd.s32 %s593_s8, %s994_s6 }
  0x32   : > { %s594_s22 = sshll.u32 %s323_s21, 2  ;;  %s908_s26 = scalar_lea.vmem %s978_s3, %s591_s7 }
  0x33   : > { %s913_s28 = scalar_lea.vmem %s977_s2, %s594_s22  ;;  %334 = sbr.rel (%p596_p12) target bundleno = 58 (0x3a), region = 74 }
  0x38   : > { %v798_v16 = vmov 0.0  }
  0x39   : > { %335 = vst [vmem:[#allocation2] sm:$0xff] %v798_v16 }
  0x3a PF: > { %v655_v17 = vld [vmem:[%s915_s29 + $0x70] sm:$0xf]  ;;  %v680_v18 = vld [vmem:[%s915_s29 + $0x74] sm:$0xf0]  ;;  %v679_v19 = vld [vmem:[%s915_s29 + $0x74] sm:$0xf] }
  0x3b   : > { %v656_v20 = vor.u32 %v680_v18, %v655_v17  ;;  %v657_v21 = vld [vmem:[%s915_s29 + $0x78] sm:$0xf0]  ;;  %v647_v22 = vld [vmem:[%s915_s29 + $0x60] sm:$0xf]  ;;  %v678_v23 = vld [vmem:[%s915_s29 + $0x64] sm:$0xf0] }
  0x3c   : > { %v660_v24 = vor.u32 %v679_v19, %v657_v21  ;;  %v677_v25 = vld [vmem:[%s915_s29 + $0x64] sm:$0xf]  ;;  %v649_v26 = vld [vmem:[%s915_s29 + $0x68] sm:$0xf0]  ;;  %v648_v27 = vor.u32 %v678_v23, %v647_v22  ;;  %v639_v29 = vld [vmem:[%s915_s29 + $0x50] sm:$0xf] }
  0x3d   : > { %437 = vmatpush.bf16.msra.mxu0 %v656_v20  ;;  %v652_v28 = vor.u32 %v677_v25, %v649_v26  ;;  %v676_v30 = vld [vmem:[%s915_s29 + $0x54] sm:$0xf0]  ;;  %v675_v31 = vld [vmem:[%s915_s29 + $0x54] sm:$0xf]  ;;  %v641_v32 = vld [vmem:[%s915_s29 + $0x58] sm:$0xf0] }
  0x3e   : > { %450 = vmatpush.bf16.msra.mxu1 %v660_v24  ;;  %v640_v33 = vor.u32 %v676_v30, %v639_v29  ;;  %v644_v34 = vor.u32 %v675_v31, %v641_v32  ;;  %v631_v35 = vld [vmem:[%s915_s29 + $0x40] sm:$0xf]  ;;  %v674_v36 = vld [vmem:[%s915_s29 + $0x44] sm:$0xf0]  ;;  %v673_v37 = vld [vmem:[%s915_s29 + $0x44] sm:$0xf] }
  0x3f   : > { %v633_v38 = vld [vmem:[%s915_s29 + $0x48] sm:$0xf0]  ;;  %v632_v39 = vor.u32 %v674_v36, %v631_v35  ;;  %v623_v41 = vld [vmem:[%s915_s29 + $0x30] sm:$0xf]  ;;  %v672_v42 = vld [vmem:[%s915_s29 + $0x34] sm:$0xf0] }
  0x40   : > { %v636_v40 = vor.u32 %v673_v37, %v633_v38  ;;  %v671_v43 = vld [vmem:[%s915_s29 + $0x34] sm:$0xf]  ;;  %v625_v44 = vld [vmem:[%s915_s29 + $0x38] sm:$0xf0]  ;;  %v624_v45 = vor.u32 %v672_v42, %v623_v41  ;;  %v615_v47 = vld [vmem:[%s915_s29 + $0x20] sm:$0xf] }
  0x41   : > { %438 = vmatpush.bf16.msra.mxu0 %v648_v27  ;;  %v628_v46 = vor.u32 %v671_v43, %v625_v44  ;;  %v670_v48 = vld [vmem:[%s915_s29 + $0x24] sm:$0xf0]  ;;  %v669_v49 = vld [vmem:[%s915_s29 + $0x24] sm:$0xf]  ;;  %v617_v50 = vld [vmem:[%s915_s29 + $0x28] sm:$0xf0] }
  0x42   : > { %451 = vmatpush.bf16.msra.mxu1 %v652_v28  ;;  %v616_v51 = vor.u32 %v670_v48, %v615_v47  ;;  %v620_v52 = vor.u32 %v669_v49, %v617_v50  ;;  %v607_v53 = vld [vmem:[%s915_s29 + $0x10] sm:$0xf]  ;;  %v668_v54 = vld [vmem:[%s915_s29 + $0x14] sm:$0xf0]  ;;  %v667_v55 = vld [vmem:[%s915_s29 + $0x14] sm:$0xf] }
  0x43   : > { %v609_v56 = vld [vmem:[%s915_s29 + $0x18] sm:$0xf0]  ;;  %v608_v57 = vor.u32 %v668_v54, %v607_v53  ;;  %v599_v59 = vld [vmem:[%s915_s29] sm:$0xf]  ;;  %v666_v60 = vld [vmem:[%s915_s29 + $0x4] sm:$0xf0] }
  0x44   : > { %v612_v58 = vor.u32 %v667_v55, %v609_v56  ;;  %v665_v61 = vld [vmem:[%s915_s29 + $0x4] sm:$0xf]  ;;  %v601_v62 = vld [vmem:[%s915_s29 + $0x8] sm:$0xf0]  ;;  %v600_v63 = vor.u32 %v666_v60, %v599_v59  ;;  %v336_v0 = vld [vmem:[%s903_s11] sm:$0xff]  ;;  %p661_p13 = scmp.ne.s32.totalorder %s780_s14, 1 }
  0x45   : > { %439 = vmatpush.bf16.msra.mxu0 %v640_v33  ;;  %v604_v1 = vor.u32 %v665_v61, %v601_v62  ;;  %v337_v2 = vpack.c.bf16 %v336_v0, %v336_v0  ;;  %v354_v7 = vld [vmem:[%s913_s28] sm:$0xff] }
  0x46   : > { %452 = vmatpush.bf16.msra.mxu1 %v644_v34  ;;  %v355_v8 = vunpack.c.l.bf16 %v354_v7  ;;  %v356_v11 = vunpack.c.h.bf16 %v354_v7  ;;  %v470_v18 = vld [vmem:[#allocation2] sm:$0xff] }
  0x49   : > { %440 = vmatpush.bf16.msra.mxu0 %v632_v39 }
  0x4a   : > { %453 = vmatpush.bf16.msra.mxu1 %v636_v40 }
  0x4d   : > { %441 = vmatpush.bf16.msra.mxu0 %v624_v45 }
  0x4e   : > { %454 = vmatpush.bf16.msra.mxu1 %v628_v46 }
  0x51   : > { %442 = vmatpush.bf16.msra.mxu0 %v616_v51 }
  0x52   : > { %455 = vmatpush.bf16.msra.mxu1 %v620_v52 }
  0x55   : > { %443 = vmatpush.bf16.msra.mxu0 %v608_v57 }
  0x56   : > { %456 = vmatpush.bf16.msra.mxu1 %v612_v58 }
  0x59   : > { %444 = vmatpush.bf16.msra.mxu0 %v600_v63 }
  0x5a   : > { %457 = vmatpush.bf16.msra.mxu1 %v604_v1 }
  0x5c   : > { %445 = vmatmul.bf16.vlgmr.msra.gmra.mxu0 %v337_v2 }
  0x5d   : > { %458 = vmatmul.bf16.vlgmr.msra.gmra.mxu1 %v337_v2 }
  0xd9   : > { %v446_v3 = vpop.f32.mrf.mxu0 }
  0xda   : > { %v447_v4 = vadd.f32 1e-10, %v446_v3  ;;  %v459_v5 = vpop.f32.mrf.mxu1 }
  0xdb   : > { %v460_v6 = vadd.f32 1e-10, %v459_v5 }
  0xdc   : > { %738 = vlog2.f32 %v447_v4 }
  0xdd   : > { %740 = vlog2.f32 %v460_v6 }
  0xe1   : > { %v448_v9 = vpop.f32.mrf.mxu0 }
  0xe2   : > { %v739_v10 = vpop.eup %738  ;;  %v461_v12 = vpop.f32.mrf.mxu1 }
  0xe3   : > { %v741_v13 = vpop.eup %740  ;;  %v464_v14 = vmul.f32 0.6931472, %v739_v10 }
  0xe4   : > { %v466_v15 = vmul.f32 0.6931472, %v741_v13 }
  0xe5   : > { %v467_v16 = vmul.f32 %v464_v14, %v355_v8 }
  0xe6   : > { %v468_v17 = vmul.f32 %v466_v15, %v356_v11 }
  0xe8   : > { %v469_v19 = vadd.f32 %v468_v17, %v467_v16  ;;  %476 = sbr.rel (%p661_p13) target bundleno = 363 (0x16b), region = 78 }
  0xea   : > { %v471_v20 = vadd.f32 %v470_v18, %v469_v19 }
  0xec   : > { %472 = vst [vmem:[#allocation2] sm:$0xff] %v471_v20 }
  0xf3   : > { %v477_v21 = vld [vmem:[#allocation2] sm:$0xff] }
  0xf4   : > { %478 = vadd.xlane.f32.xlu0 %v477_v21 }
 0x167   : > { %v479_v22 = vpop.xlane.xlu0 %478 }
 0x168   : > { %v480_v23 = vsub.f32 0.0, %v479_v22 }
 0x16a   : > { %481 = vst [vmem:[%s908_s26] sm:$0xff] %v480_v23 }
 0x16b PF: > { %s13_s18 = sadd.s32 1, %s796_s18   ;;  %s979_s12 = smov %s776_s13 }
 0x16c   : > { %p10_p0 = scmp.ge.s32.totalorder %s13_s18, 6   ;;  %s980_s13 = smov %s868_s23 }
 0x16d   : > { %s981_s14 = smov %s788_s16  ;;  %s982_s15 = smov %s792_s17 }
 0x16e   : > { %s983_s16 = smov %s986_s19  ;;  %s984_s17 = smov %s990_s20 }
 0x16f   :  { %12 = sbr.rel (!%p10_p0) target bundleno = 4 (0x4), region = 119 }

</bundles_post_ra>
